<compile_context>
chip_gen: v7x
topology: tpu7x:2x2x1
jax: 0.10.0
libtpu: 0.0.40
codegen_flags: <defaults>
</compile_context>

<pallas_src>
import functools

import jax
import jax.numpy as jnp
from jax import lax
from jax.experimental import pallas as pl
from jax.experimental.pallas import tpu as pltpu


# ---------------------------------------------------------------------------
# Path A: small table — full table resident in VMEM, single grid step.
# ---------------------------------------------------------------------------
def _small_table_kernel(sites_ref, table_ref, out_ref):
    """sites_ref: (B,) int32 SMEM; table_ref: (V, D) VMEM; out_ref: (B, D) VMEM."""
    num_lookups = out_ref.shape[0]

    def copy_row(i, carry):
        row = sites_ref[i]
        out_ref[pl.ds(i, 1), :] = table_ref[pl.ds(row, 1), :]
        return carry

    # Short, fixed trip count -> unroll for LLO scheduler visibility.
    lax.fori_loop(0, num_lookups, copy_row, 0, unroll=True)


def _embedding_lookup_small_table(sites, table):
    """Gather rows of `table` at `sites`; whole table staged in VMEM."""
    B = sites.shape[0]
    V, D = table.shape

    grid_spec = pltpu.PrefetchScalarGridSpec(
        num_scalar_prefetch=1,                 # `sites` -> SMEM
        grid=(1,),                             # single step: no per-row step overhead
        in_specs=[pl.BlockSpec((V, D), lambda i, sites_ref: (0, 0))],
        out_specs=pl.BlockSpec((B, D), lambda i, sites_ref: (0, 0)),
    )
    return pl.pallas_call(
        _small_table_kernel,
        out_shape=jax.ShapeDtypeStruct((B, D), table.dtype),
        grid_spec=grid_spec,
        compiler_params=pltpu.CompilerParams(
            dimension_semantics=("arbitrary",),   # tiny grid: don't shard across TCs
        ),
    )(sites.astype(jnp.int32), table)


# ---------------------------------------------------------------------------
# Path B: large table — table stays in HBM, K row-DMAs in flight per grid step.
# ---------------------------------------------------------------------------
def _dma_gather_kernel(lookups_per_step, sites_ref, table_hbm, out_ref, rows_vmem, sems):
    """sites_ref: (Bpad,) int32 SMEM; table_hbm: (V, D) HBM ref;
    out_ref/rows_vmem: (K, D); sems: (K,) DMA semaphores."""
    step = pl.program_id(0)
    K = lookups_per_step

    def start(i, carry):
        row = sites_ref[step * K + i]
        pltpu.make_async_copy(
            table_hbm.at[pl.ds(row, 1), :],
            rows_vmem.at[pl.ds(i, 1), :],
            sems.at[i],
        ).start()
        return carry

    # Issue all K row gathers back-to-back so their HBM latencies overlap.
    lax.fori_loop(0, K, start, 0, unroll=True)

    def wait(i, carry):
        pltpu.make_async_copy(
            table_hbm.at[pl.ds(0, 1), :],      # dummy src: same shape for byte count
            rows_vmem.at[pl.ds(i, 1), :],
            sems.at[i],
        ).wait()
        return carry

    lax.fori_loop(0, K, wait, 0, unroll=True)

    # One sublane-aligned (K, D) block store (unmasked when D % 128 == 0).
    out_ref[...] = rows_vmem[...]


def _embedding_lookup_dma_gather(sites, table, *, lookups_per_step=8):
    """Gather rows of `table` at `sites`; table never leaves HBM in full."""
    B = sites.shape[0]
    V, D = table.shape
    K = lookups_per_step

    sites_i32 = sites.astype(jnp.int32)
    pad = (-B) % K
    if pad:
        sites_i32 = jnp.concatenate([sites_i32, jnp.zeros((pad,), jnp.int32)])
    padded = B + pad

    grid_spec = pltpu.PrefetchScalarGridSpec(
        num_scalar_prefetch=1,                 # `sites` -> SMEM
        grid=(padded // K,),                   # K lookups per grid step
        in_specs=[pl.BlockSpec(memory_space=pl.ANY)],   # table stays in HBM
        out_specs=pl.BlockSpec((K, D), lambda g, sites_ref: (g, 0)),
        scratch_shapes=[
            pltpu.VMEM((K, D), table.dtype),
            pltpu.SemaphoreType.DMA((K,)),
        ],
    )
    out = pl.pallas_call(
        functools.partial(_dma_gather_kernel, K),
        out_shape=jax.ShapeDtypeStruct((padded, D), table.dtype),
        grid_spec=grid_spec,
        compiler_params=pltpu.CompilerParams(
            dimension_semantics=("arbitrary",),
        ),
    )(sites_i32, table)
    return out[:B] if pad else out


# ---------------------------------------------------------------------------
# Dispatcher: pick the path by per-generation VMEM budget (avoid v7x cliff).
# ---------------------------------------------------------------------------
def cnn_site_embedding_forward(sites, table, *, vmem_table_budget_bytes=None,
                               lookups_per_step=8):
    """sites: (B,) integer site indices; table: (V, D) embedding weights."""
    V, D = table.shape
    table_bytes = V * D * jnp.dtype(table.dtype).itemsize

    if vmem_table_budget_bytes is None:
        try:
            vmem_cap = pltpu.get_tpu_info().vmem_capacity_bytes
        except Exception:
            vmem_cap = 64 << 20                # conservative (v7x: 64 MiB per TC)
        vmem_table_budget_bytes = vmem_cap // 2   # headroom for output + pipeline bufs

    if table_bytes <= vmem_table_budget_bytes:
        return _embedding_lookup_small_table(sites, table)
    return _embedding_lookup_dma_gather(sites, table,
                                        lookups_per_step=lookups_per_step)


if __name__ == "__main__":
    key = jax.random.PRNGKey(0)
    k_table, k_sites, k_table2, k_sites2 = jax.random.split(key, 4)

    # ---- Toy config implied by the module: 16 sites, embedding_dim=32, 8 lookups.
    num_sites, embedding_dim, batch = 16, 32, 8
    table = jax.random.normal(k_table, (num_sites, embedding_dim), dtype=jnp.float32)
    sites = jax.random.randint(k_sites, (batch,), 0, num_sites, dtype=jnp.int32)

    out = jax.block_until_ready(cnn_site_embedding_forward(sites, table))
    ref = jnp.take(table, sites, axis=0)
    assert out.shape == (batch, embedding_dim)
    assert bool(jnp.array_equal(out, ref)), "small-table path mismatch vs. reference"

    # ---- Also exercise the production (HBM-resident, batched-DMA) path.
    V2, D2, B2 = 64, 128, 16                   # D2 multiple of 128 -> lane-dense stores
    table2 = jax.random.normal(k_table2, (V2, D2), dtype=jnp.float32)
    sites2 = jax.random.randint(k_sites2, (B2,), 0, V2, dtype=jnp.int32)

    out2 = jax.block_until_ready(
        _embedding_lookup_dma_gather(sites2, table2, lookups_per_step=8))
    ref2 = jnp.take(table2, sites2, axis=0)
    assert out2.shape == (B2, D2)
    assert bool(jnp.array_equal(out2, ref2)), "dma-gather path mismatch vs. reference"

    print("KERNEL_OK")
</pallas_src>

<mosaic_0001>
module attributes {stable_mosaic.version = 11 : i64} {
  func.func @_small_table_kernel(%arg0: i32, %arg1: memref<8xi32, #tpu.memory_space<smem>>, %arg2: memref<16x32xf32, #tpu.memory_space<vmem>>, %arg3: memref<8x32xf32, #tpu.memory_space<vmem>>) attributes {dimension_semantics = [#tpu.dimension_semantics<arbitrary>], iteration_bounds = array<i64: 1>, scalar_prefetch = 1 : i64, scratch_operands = 0 : i64, tpu.core_type = #tpu.core_type<tc>, window_params = [{pipeline_mode = #tpu.pipeline_mode<synchronous>, transform_indices = @transform_0, window_bounds = array<i64: 16, 32>}, {pipeline_mode = #tpu.pipeline_mode<synchronous>, transform_indices = @transform_1, window_bounds = array<i64: 8, 32>}]} {
    %c0_i32 = arith.constant 0 : i32
    %0 = arith.index_cast %c0_i32 : i32 to index
    %1 = memref.load %arg1[%0] : memref<8xi32, #tpu.memory_space<smem>>
    %2 = arith.index_cast %1 : i32 to index
    %c0 = arith.constant 0 : index
    %3 = vector.load %arg2[%2, %c0] : memref<16x32xf32, #tpu.memory_space<vmem>>, vector<1x32xf32>
    %4 = arith.index_cast %c0_i32 : i32 to index
    %c0_0 = arith.constant 0 : index
    %5 = vector.load %arg3[%4, %c0_0] : memref<8x32xf32, #tpu.memory_space<vmem>>, vector<1x32xf32>
    tpu.vector_store %arg3[%4, %c0_0], %3 {strides = array<i32>} : memref<8x32xf32, #tpu.memory_space<vmem>>, vector<1x32xf32>,
    %c1_i32 = arith.constant 1 : i32
    %6 = arith.index_cast %c1_i32 : i32 to index
    %7 = memref.load %arg1[%6] : memref<8xi32, #tpu.memory_space<smem>>
    %8 = arith.index_cast %7 : i32 to index
    %c0_1 = arith.constant 0 : index
    %9 = vector.load %arg2[%8, %c0_1] : memref<16x32xf32, #tpu.memory_space<vmem>>, vector<1x32xf32>
    %10 = arith.index_cast %c1_i32 : i32 to index
    %c0_2 = arith.constant 0 : index
    %11 = vector.load %arg3[%10, %c0_2] : memref<8x32xf32, #tpu.memory_space<vmem>>, vector<1x32xf32>
    tpu.vector_store %arg3[%10, %c0_2], %9 {strides = array<i32>} : memref<8x32xf32, #tpu.memory_space<vmem>>, vector<1x32xf32>,
    %c2_i32 = arith.constant 2 : i32
    %12 = arith.index_cast %c2_i32 : i32 to index
    %13 = memref.load %arg1[%12] : memref<8xi32, #tpu.memory_space<smem>>
    %14 = arith.index_cast %13 : i32 to index
    %c0_3 = arith.constant 0 : index
    %15 = vector.load %arg2[%14, %c0_3] : memref<16x32xf32, #tpu.memory_space<vmem>>, vector<1x32xf32>
    %16 = arith.index_cast %c2_i32 : i32 to index
    %c0_4 = arith.constant 0 : index
    %17 = vector.load %arg3[%16, %c0_4] : memref<8x32xf32, #tpu.memory_space<vmem>>, vector<1x32xf32>
    tpu.vector_store %arg3[%16, %c0_4], %15 {strides = array<i32>} : memref<8x32xf32, #tpu.memory_space<vmem>>, vector<1x32xf32>,
    %c3_i32 = arith.constant 3 : i32
    %18 = arith.index_cast %c3_i32 : i32 to index
    %19 = memref.load %arg1[%18] : memref<8xi32, #tpu.memory_space<smem>>
    %20 = arith.index_cast %19 : i32 to index
    %c0_5 = arith.constant 0 : index
    %21 = vector.load %arg2[%20, %c0_5] : memref<16x32xf32, #tpu.memory_space<vmem>>, vector<1x32xf32>
    %22 = arith.index_cast %c3_i32 : i32 to index
    %c0_6 = arith.constant 0 : index
    %23 = vector.load %arg3[%22, %c0_6] : memref<8x32xf32, #tpu.memory_space<vmem>>, vector<1x32xf32>
    tpu.vector_store %arg3[%22, %c0_6], %21 {strides = array<i32>} : memref<8x32xf32, #tpu.memory_space<vmem>>, vector<1x32xf32>,
    %c4_i32 = arith.constant 4 : i32
    %24 = arith.index_cast %c4_i32 : i32 to index
    %25 = memref.load %arg1[%24] : memref<8xi32, #tpu.memory_space<smem>>
    %26 = arith.index_cast %25 : i32 to index
    %c0_7 = arith.constant 0 : index
    %27 = vector.load %arg2[%26, %c0_7] : memref<16x32xf32, #tpu.memory_space<vmem>>, vector<1x32xf32>
    %28 = arith.index_cast %c4_i32 : i32 to index
    %c0_8 = arith.constant 0 : index
    %29 = vector.load %arg3[%28, %c0_8] : memref<8x32xf32, #tpu.memory_space<vmem>>, vector<1x32xf32>
    tpu.vector_store %arg3[%28, %c0_8], %27 {strides = array<i32>} : memref<8x32xf32, #tpu.memory_space<vmem>>, vector<1x32xf32>,
    %c5_i32 = arith.constant 5 : i32
    %30 = arith.index_cast %c5_i32 : i32 to index
    %31 = memref.load %arg1[%30] : memref<8xi32, #tpu.memory_space<smem>>
    %32 = arith.index_cast %31 : i32 to index
    %c0_9 = arith.constant 0 : index
    %33 = vector.load %arg2[%32, %c0_9] : memref<16x32xf32, #tpu.memory_space<vmem>>, vector<1x32xf32>
    %34 = arith.index_cast %c5_i32 : i32 to index
    %c0_10 = arith.constant 0 : index
    %35 = vector.load %arg3[%34, %c0_10] : memref<8x32xf32, #tpu.memory_space<vmem>>, vector<1x32xf32>
    tpu.vector_store %arg3[%34, %c0_10], %33 {strides = array<i32>} : memref<8x32xf32, #tpu.memory_space<vmem>>, vector<1x32xf32>,
    %c6_i32 = arith.constant 6 : i32
    %36 = arith.index_cast %c6_i32 : i32 to index
    %37 = memref.load %arg1[%36] : memref<8xi32, #tpu.memory_space<smem>>
    %38 = arith.index_cast %37 : i32 to index
    %c0_11 = arith.constant 0 : index
    %39 = vector.load %arg2[%38, %c0_11] : memref<16x32xf32, #tpu.memory_space<vmem>>, vector<1x32xf32>
    %40 = arith.index_cast %c6_i32 : i32 to index
    %c0_12 = arith.constant 0 : index
    %41 = vector.load %arg3[%40, %c0_12] : memref<8x32xf32, #tpu.memory_space<vmem>>, vector<1x32xf32>
    tpu.vector_store %arg3[%40, %c0_12], %39 {strides = array<i32>} : memref<8x32xf32, #tpu.memory_space<vmem>>, vector<1x32xf32>,
    %c7_i32 = arith.constant 7 : i32
    %42 = arith.index_cast %c7_i32 : i32 to index
    %43 = memref.load %arg1[%42] : memref<8xi32, #tpu.memory_space<smem>>
    %44 = arith.index_cast %43 : i32 to index
    %c0_13 = arith.constant 0 : index
    %45 = vector.load %arg2[%44, %c0_13] : memref<16x32xf32, #tpu.memory_space<vmem>>, vector<1x32xf32>
    %46 = arith.index_cast %c7_i32 : i32 to index
    %c0_14 = arith.constant 0 : index
    %47 = vector.load %arg3[%46, %c0_14] : memref<8x32xf32, #tpu.memory_space<vmem>>, vector<1x32xf32>
    tpu.vector_store %arg3[%46, %c0_14], %45 {strides = array<i32>} : memref<8x32xf32, #tpu.memory_space<vmem>>, vector<1x32xf32>,
    %c8_i32 = arith.constant 8 : i32
    return
  }
  func.func @transform_0(%arg0: i32, %arg1: memref<8xi32, #tpu.memory_space<smem>>) -> (i32, i32) {
    %c0_i32 = arith.constant 0 : i32
    %c0_i32_0 = arith.constant 0 : i32
    %c0_i32_1 = arith.constant 0 : i32
    return %c0_i32, %c0_i32_0 : i32, i32
  }
  func.func @transform_1(%arg0: i32, %arg1: memref<8xi32, #tpu.memory_space<smem>>) -> (i32, i32) {
    %c0_i32 = arith.constant 0 : i32
    %c0_i32_0 = arith.constant 0 : i32
    %c0_i32_1 = arith.constant 0 : i32
    return %c0_i32, %c0_i32_0 : i32, i32
  }
}

</mosaic_0001>

<bundles_post_ra>
// kernel: tpu_custom_call.1
= control target key start
LH: loop header
LB: loop body
LE: loop exit
PB: predicated region body
PF: predicated region fallthrough
CT: control target
= control target key end

     0   :  { %s227_s0 = inlined_call_operand.hbm [shape: s32[8], index: 0, kind: input, shape index: {}]   ;;  %s228_s1 = inlined_call_operand.hbm [shape: f32[16,32], index: 1, kind: input, shape index: {}]   ;;  %s229_s2 = inlined_call_operand.hbm [shape: f32[8,32], index: 2, kind: output, shape index: {}]  }
   0x1   :  { %s96_s11 = scalar_lea.hbm %s227_s0, 16 }
   0x2   :  { %p97_p0 = scmp.ne.s32.totalorder %s227_s0, %s96_s11  ;;  %p100_p1 = scmp.lt.u32.totalorder %s96_s11, %s227_s0 }
   0x4   :  { %p102_p2 = pnand %p100_p1, %p97_p0 }
   0x6   :  { %105 = shalt.err (!%p102_p2)  }
   0x7   :  { %s156_s16 = smov [#allocation3]  }
   0x8   :  { %8 = dma.hbm_to_smem %s227_s0, 16, %s156_s16, [#allocation2] }
   0x9   :  { %150 = dma.done.wait [#allocation2], 16 }
   0xa   :  { %151 = vsyncadd [#allocation2], 4294967280 }
   0xb   :  { %10 = sfence }
   0xc   :  { %11 = vsyncpa [#allocation5], 0 }
   0xd   :  { %12 = vsyncpa [#allocation6], 0  ;;  %s157_s19 = smov [#allocation4]   ;;  %s106_s23 = scalar_lea.hbm %s228_s1, 256 }
   0xe   :  { %s18_s20 = sshll.u32 %s157_s19, 4  ;;  %p107_p3 = scmp.ne.s32.totalorder %s228_s1, %s106_s23  ;;  %s19_s20 = int_to_ptr.vmem [resolvable:$true] %s18_s20 }
   0xf   :  { %p110_p4 = scmp.lt.u32.totalorder %s106_s23, %s228_s1 }
  0x11   :  { %p112_p5 = pnand %p110_p4, %p107_p3 }
  0x13   :  { %115 = shalt.err (!%p112_p5)
}
  0x14   :  { %s116_s0 = scalar_lea.vmem %s19_s20, 256  ;;  %p121_p7 = scmp.lt.s32.totalorder %s19_s20, %s19_s20 }
  0x15   :  { %p117_p6 = scmp.ne.s32.totalorder %s19_s20, %s116_s0  ;;  %p122_p8 = scmp.lt.s32.totalorder %s116_s0, %s116_s0 }
  0x17   :  { %p123_p9 = por %p122_p8, %p121_p7 }
  0x19   :  { %p124_p10 = pnand %p123_p9, %p117_p6 }
  0x1b   :  { %127 = shalt.err (!%p124_p10)
}
  0x1c   :  { %s158_s28 = smov 128   ;;  %s159_s29 = smov 8  }
  0x1d   :  { %24 = dma.hbm_to_vmem [thread:$0]  %s228_s1, 256, %s19_s20, [#allocation5], %s158_s28, %s158_s28, %s159_s29  }
  0x1e   :  { %152 = dma.done.wait [#allocation5], 256  }
  0x1f   :  { %153 = vsyncadd [#allocation5], 4294967040  ;;  %s28_s4 = sld [smem:[#allocation3]]  ;;  %s84_s5 = sld [smem:[#allocation3 + $0x1]]  ;;  %vm31_vm0 = vcmask 253952  }
  0x20   :  { %s85_s6 = sld [smem:[#allocation3 + $0x2]]  ;;  %s86_s7 = sld [smem:[#allocation3 + $0x3]] }
  0x21   :  { %s87_s8 = sld [smem:[#allocation3 + $0x4]]  ;;  %s88_s9 = sld [smem:[#allocation3 + $0x5]] }
  0x22   :  { %s89_s10 = sld [smem:[#allocation3 + $0x6]]  ;;  %s90_s11 = sld [smem:[#allocation3 + $0x7]] }
  0x23   :  { %s160_s12 = smov [#allocation7]  }
  0x24   :  { %s67_s13 = sshll.u32 %s160_s12, 4  ;;  %s200_s13 = int_to_ptr.vmem [resolvable:$true] %s67_s13 }
  0x25   :  { %s29_s14 = scalar_lea.vmem [#allocation4], %s28_s4  ;;  %s34_s15 = scalar_lea.vmem [#allocation4], %s84_s5 }
  0x26   :  { %v30_v0 = vld [vmem:[%s29_s14] sm:$0x1]  ;;  %s38_s1 = scalar_lea.vmem [#allocation4], %s85_s6  ;;  %s42_s16 = scalar_lea.vmem [#allocation4], %s86_s7 }
  0x27   :  { %v35_v1 = vld [vmem:[%s34_s15] sm:$0x1]  ;;  %32 = vst.msk [vmem:[#allocation7] sm:$0x1] %vm31_vm0, %v30_v0  ;;  %s46_s17 = scalar_lea.vmem [#allocation4], %s87_s8  ;;  %s50_s18 = scalar_lea.vmem [#allocation4], %s88_s9 }
  0x28   :  { %36 = vst.msk [vmem:[#allocation7 + $0x1] sm:$0x1] %vm31_vm0, %v35_v1  ;;  %v39_v2 = vld [vmem:[%s38_s1] sm:$0x1]  ;;  %s54_s19 = scalar_lea.vmem [#allocation4], %s89_s10  ;;  %s58_s20 = scalar_lea.vmem [#allocation4], %s90_s11 }
  0x29   :  { %v43_v3 = vld [vmem:[%s42_s16] sm:$0x1]  ;;  %40 = vst.msk [vmem:[#allocation7 + $0x2] sm:$0x1] %vm31_vm0, %v39_v2  ;;  %s128_s21 = scalar_lea.vmem %s200_s13, 128  ;;  %p133_p12 = scmp.lt.s32.totalorder %s200_s13, %s200_s13 }
  0x2a   :  { %44 = vst.msk [vmem:[#allocation7 + $0x3] sm:$0x1] %vm31_vm0, %v43_v3  ;;  %v47_v4 = vld [vmem:[%s46_s17] sm:$0x1]  ;;  %p129_p11 = scmp.ne.s32.totalorder %s200_s13, %s128_s21  ;;  %p134_p13 = scmp.lt.s32.totalorder %s128_s21, %s128_s21 }
  0x2b   :  { %v51_v5 = vld [vmem:[%s50_s18] sm:$0x1]  ;;  %48 = vst.msk [vmem:[#allocation7 + $0x4] sm:$0x1] %vm31_vm0, %v47_v4 }
  0x2c   :  { %52 = vst.msk [vmem:[#allocation7 + $0x5] sm:$0x1] %vm31_vm0, %v51_v5  ;;  %v55_v6 = vld [vmem:[%s54_s19] sm:$0x1]  ;;  %p135_p0 = por %p134_p13, %p133_p12 }
  0x2d   :  { %v59_v7 = vld [vmem:[%s58_s20] sm:$0x1]  ;;  %56 = vst.msk [vmem:[#allocation7 + $0x6] sm:$0x1] %vm31_vm0, %v55_v6 }
  0x2e   :  { %60 = vst.msk [vmem:[#allocation7 + $0x7] sm:$0x1] %vm31_vm0, %v59_v7  ;;  %p136_p1 = pnand %p135_p0, %p129_p11 }
  0x30   :  { %139 = shalt.err (!%p136_p1)
}
  0x31   :  { %s140_s24 = scalar_lea.hbm %s229_s2, 128 }
  0x32   :  { %p141_p2 = scmp.ne.s32.totalorder %s229_s2, %s140_s24  ;;  %p144_p3 = scmp.lt.u32.totalorder %s140_s24, %s229_s2 }
  0x34   :  { %p146_p4 = pnand %p144_p3, %p141_p2 }
  0x36   :  { %149 = shalt.err (!%p146_p4)
}
  0x37   :  { %70 = dma.vmem_to_hbm [thread:$0]  %s200_s13, 128, %s229_s2, [#allocation6]  }
  0x38   :  { %154 = dma.done.wait [#allocation6], 128  }
  0x39   :  { %155 = vsyncadd [#allocation6], 4294967168 }
  0x3a   :  { %74 = vsyncpa [#allocation5], 1 }
  0x3b   :  { %75 = vsyncpa [#allocation6], 1 }

</bundles_post_ra>
